<compile_context>
chip_gen: v7x
topology: tpu7x:2x2x1
jax: 0.10.0
libtpu: 0.0.40
codegen_flags: <defaults>
</compile_context>

<pallas_src>
import jax
import jax.numpy as jnp
from jax.experimental import pallas as pl
from jax.experimental.pallas import tpu as pltpu


def _copy_kernel(x_ref, o_ref):
    # Pure pass-through: the chomp lives in the BlockSpecs / grid.
    o_ref[...] = x_ref[...]


def _round_up(x: int, m: int) -> int:
    return (x + m - 1) // m * m


def _ceil_div(a: int, b: int) -> int:
    return (a + b - 1) // b


def chomp1d(x: jax.Array, chomp_size: int) -> jax.Array:
    """Removes the last `chomp_size` elements along the last axis of (B, C, L) x."""
    if chomp_size < 0:
        raise ValueError("chomp_size must be non-negative")
    if chomp_size == 0:
        return x

    B, C, L = x.shape
    l_out = L - chomp_size
    assert l_out > 0, "chomp_size must be smaller than the sequence length"

    rows = B * C
    itemsize = jnp.dtype(x.dtype).itemsize
    # Sublane packing: 8 rows/vreg for 32-bit, 16 for 16-bit, 32 for 8-bit.
    pack = 8 * max(1, 4 // itemsize)

    # ---- Generation-aware block / VMEM budget -------------------------------
    try:
        vmem_capacity = pltpu.get_tpu_info().vmem_capacity_bytes
    except Exception:  # conservative fallback (v7x has the smallest VMEM: 64 MiB)
        vmem_capacity = 64 * 1024 * 1024
    # ~4 MiB blocks sit on the tiled-copy roofline plateau; clamp so that
    # 4x block (double-buffered in + out) stays a small fraction of VMEM.
    block_cap = max(512 * 1024, min(4 * 1024 * 1024, vmem_capacity // 16))
    vmem_limit = min(vmem_capacity // 2, max(8 * block_cap, 16 * 1024 * 1024))

    # ---- Tiling: lane tile first (contiguity), then rows --------------------
    lane_full = _round_up(l_out, 128)
    max_lanes = max(128, (block_cap // (pack * itemsize)) // 128 * 128)
    lane_tile = min(lane_full, max_lanes)

    max_rows = max(pack, (block_cap // (lane_tile * itemsize)) // pack * pack)
    rows_padded = _round_up(rows, pack)
    if rows_padded <= max_rows:
        row_tile = rows_padded
    else:
        # Even out row blocks so the trailing block is not mostly padding.
        n_row_blocks = _ceil_div(rows, max_rows)
        row_tile = _round_up(_ceil_div(rows, n_row_blocks), pack)

    grid_r = _ceil_div(rows, row_tile)
    grid_c = _ceil_div(l_out, lane_tile)
    # v7x megacore: make sure there are >= 2 parallel blocks when possible.
    if grid_r * grid_c == 1 and rows >= 2 * pack:
        row_tile = _round_up(_ceil_div(rows, 2), pack)
        grid_r = _ceil_div(rows, row_tile)

    x2 = x.reshape(rows, L)
    grid = (grid_r, grid_c)

    out2 = pl.pallas_call(
        _copy_kernel,
        out_shape=jax.ShapeDtypeStruct((rows, l_out), x.dtype),
        grid_spec=pltpu.PrefetchScalarGridSpec(
            num_scalar_prefetch=0,
            grid=grid,
            # Same block index map for input and output: input block (r, c)
            # covers columns [c*lane_tile, (c+1)*lane_tile); the last lane
            # block may read a few padded columns past l_out, but those lanes
            # are clipped on the output write, so the result is exactly
            # x[:, :, :l_out].
            in_specs=[pl.BlockSpec((row_tile, lane_tile), lambda r, c: (r, c))],
            out_specs=pl.BlockSpec((row_tile, lane_tile), lambda r, c: (r, c)),
        ),
        compiler_params=pltpu.CompilerParams(
            dimension_semantics=("parallel", "parallel"),
            vmem_limit_bytes=int(vmem_limit),
        ),
        cost_estimate=pl.CostEstimate(
            flops=0,
            transcendentals=0,
            bytes_accessed=2 * rows * l_out * itemsize,
        ),
    )(x2)

    return out2.reshape(B, C, l_out)


if __name__ == "__main__":
    key = jax.random.PRNGKey(0)

    # Primary small example consistent with the module's (B, C, L) input.
    B, C, L = 2, 4, 16
    chomp_size = 5
    x = jax.random.normal(key, (B, C, L), dtype=jnp.float32)

    out = jax.block_until_ready(chomp1d(x, chomp_size))
    ref = x[:, :, : L - chomp_size]
    assert out.shape == (B, C, L - chomp_size), out.shape
    assert jnp.array_equal(out, ref), "mismatch vs reference slice"

    # chomp_size == 0 path returns the input unchanged.
    assert jnp.array_equal(chomp1d(x, 0), x)

    # Rows not a multiple of the sublane pack and an odd l_out, exercising the
    # padded / masked remainder tiles.
    B2, C2, L2, s2 = 3, 5, 40, 7
    x2 = jax.random.normal(jax.random.PRNGKey(0), (B2, C2, L2), dtype=jnp.float32)
    out2 = jax.block_until_ready(chomp1d(x2, s2))
    assert out2.shape == (B2, C2, L2 - s2), out2.shape
    assert jnp.array_equal(out2, x2[:, :, : L2 - s2]), "mismatch vs reference slice (case 2)"

    # A longer-L case where a single lane tile spans the whole output row and
    # the row axis is split across >= 2 grid blocks (megacore path).
    B3, C3, L3, s3 = 2, 8, 300, 44
    x3 = jax.random.normal(jax.random.PRNGKey(0), (B3, C3, L3), dtype=jnp.float32)
    out3 = jax.block_until_ready(chomp1d(x3, s3))
    assert out3.shape == (B3, C3, L3 - s3), out3.shape
    assert jnp.array_equal(out3, x3[:, :, : L3 - s3]), "mismatch vs reference slice (case 3)"

    print("KERNEL_OK")
</pallas_src>

<mosaic_0001>
module attributes {stable_mosaic.version = 11 : i64} {
  func.func @_copy_kernel(%arg0: i32, %arg1: i32, %arg2: memref<8x128xf32, #tpu.memory_space<vmem>>, %arg3: memref<8x128xf32, #tpu.memory_space<vmem>>) attributes {dimension_semantics = [#tpu.dimension_semantics<parallel>, #tpu.dimension_semantics<parallel>], iteration_bounds = array<i64: 1, 1>, scalar_prefetch = 0 : i64, scratch_operands = 0 : i64, tpu.core_type = #tpu.core_type<tc>, window_params = [{transform_indices = @transform_0, window_bounds = array<i64: 8, 128>}, {transform_indices = @transform_1, window_bounds = array<i64: 8, 128>}]} {
    %c0 = arith.constant 0 : index
    %c0_0 = arith.constant 0 : index
    %0 = vector.load %arg2[%c0, %c0_0] : memref<8x128xf32, #tpu.memory_space<vmem>>, vector<8x128xf32>
    %c0_1 = arith.constant 0 : index
    %c0_2 = arith.constant 0 : index
    %1 = vector.load %arg3[%c0_1, %c0_2] : memref<8x128xf32, #tpu.memory_space<vmem>>, vector<8x128xf32>
    tpu.vector_store %arg3[%c0_1, %c0_2], %0 {strides = array<i32>} : memref<8x128xf32, #tpu.memory_space<vmem>>, vector<8x128xf32>,
    return
  }
  func.func @transform_0(%arg0: i32, %arg1: i32) -> (i32, i32) {
    %c0_i32 = arith.constant 0 : i32
    return %arg0, %arg1 : i32, i32
  }
  func.func @transform_1(%arg0: i32, %arg1: i32) -> (i32, i32) {
    %c0_i32 = arith.constant 0 : i32
    return %arg0, %arg1 : i32, i32
  }
}

</mosaic_0001>

<bundles_post_ra>
// kernel: tpu_custom_call.1
= control target key start
LH: loop header
LB: loop body
LE: loop exit
PB: predicated region body
PF: predicated region fallthrough
CT: control target
= control target key end

     0   :  { %6 = vsyncpa [#allocation3], 0  ;;  %s124_s0 = inlined_call_operand.hbm [shape: f32[8,16], index: 0, kind: input, shape index: {}]   ;;  %s125_s1 = inlined_call_operand.hbm [shape: f32[8,11], index: 1, kind: output, shape index: {}]  }
   0x1   :  { %7 = vsyncpa [#allocation4], 0  ;;  %s88_s6 = smov [#allocation2]   ;;  %s40_s10 = scalar_lea.hbm %s124_s0, 128 }
   0x2   :  { %s14_s7 = sshll.u32 %s88_s6, 4  ;;  %p41_p0 = scmp.ne.s32.totalorder %s124_s0, %s40_s10  ;;  %s15_s7 = int_to_ptr.vmem [resolvable:$true] %s14_s7 }
   0x3   :  { %p44_p1 = scmp.lt.u32.totalorder %s40_s10, %s124_s0 }
   0x5   :  { %p46_p2 = pnand %p44_p1, %p41_p0 }
   0x7   :  { %49 = shalt.err (!%p46_p2)
}
   0x8   :  { %s50_s15 = scalar_lea.vmem %s15_s7, 128  ;;  %p55_p4 = scmp.lt.s32.totalorder %s15_s7, %s15_s7 }
   0x9   :  { %p51_p3 = scmp.ne.s32.totalorder %s15_s7, %s50_s15  ;;  %p56_p5 = scmp.lt.s32.totalorder %s50_s15, %s50_s15 }
   0xb   :  { %p57_p6 = por %p56_p5, %p55_p4 }
   0xd   :  { %p58_p7 = pnand %p57_p6, %p51_p3 }
   0xf   :  { %61 = shalt.err (!%p58_p7)
}
  0x10   :  { %17 = dma.hbm_to_vmem [thread:$0]  %s124_s0, 128, %s15_s7, [#allocation3]  }
  0x11   :  { %84 = dma.done.wait [#allocation3], 128  }
  0x12   :  { %85 = vsyncadd [#allocation3], 4294967168  ;;  %s89_s18 = smov [#allocation5]   ;;  %v21_v0 = vld [vmem:[#allocation2] sm:$0xff] }
  0x13   :  { %s29_s19 = sshll.u32 %s89_s18, 4  ;;  %22 = vst [vmem:[#allocation5] sm:$0xff] %v21_v0  ;;  %s30_s19 = int_to_ptr.vmem [resolvable:$true] %s29_s19 }
  0x14   :  { %s62_s20 = scalar_lea.vmem %s30_s19, 128  ;;  %p67_p9 = scmp.lt.s32.totalorder %s30_s19, %s30_s19 }
  0x15   :  { %p63_p8 = scmp.ne.s32.totalorder %s30_s19, %s62_s20  ;;  %p68_p10 = scmp.lt.s32.totalorder %s62_s20, %s62_s20 }
  0x17   :  { %p69_p11 = por %p68_p10, %p67_p9 }
  0x19   :  { %p70_p12 = pnand %p69_p11, %p63_p8 }
  0x1b   :  { %73 = shalt.err (!%p70_p12)
}
  0x1c   :  { %s74_s23 = scalar_lea.hbm %s125_s1, 128 }
  0x1d   :  { %p75_p13 = scmp.ne.s32.totalorder %s125_s1, %s74_s23  ;;  %p78_p0 = scmp.lt.u32.totalorder %s74_s23, %s125_s1 }
  0x1f   :  { %p80_p1 = pnand %p78_p0, %p75_p13 }
  0x21   :  { %83 = shalt.err (!%p80_p1)
}
  0x22   :  { %32 = dma.vmem_to_hbm [thread:$0]  %s30_s19, 128, %s125_s1, [#allocation4]  }
  0x23   :  { %86 = dma.done.wait [#allocation4], 128  }
  0x24   :  { %87 = vsyncadd [#allocation4], 4294967168 }
  0x25   :  { %36 = vsyncpa [#allocation3], 1 }
  0x26   :  { %37 = vsyncpa [#allocation4], 1 }

</bundles_post_ra>
